<compile_context>
chip_gen: v6e
topology: v6e:2x2x1
jax: 0.10.0
libtpu: 0.0.40
codegen_flags: <defaults>
</compile_context>

<pallas_src>
import functools

import numpy as np
import jax
import jax.numpy as jnp
from jax.experimental import pallas as pl
from jax.experimental.pallas import tpu as pltpu


def _select_kernel(idx_ref, cap_ref, out_ref):
    """Copy one tile of the (already gathered) selected caption to the output.

    The data-dependent part (which caption) happened in the BlockSpec
    index_map via the SMEM-prefetched index; here we only move bytes.
    """
    del idx_ref  # consumed only by the index_map
    out_ref[...] = cap_ref[0]


def _pick_tile(r: int) -> int:
    """Row-tile size: full extent for small payloads, else a /8 divisor."""
    if r <= 1024:
        return r
    for t in (1024, 512, 256, 128, 64, 32, 16, 8):
        if r % t == 0:
            return t
    return r  # fall back to a single full-extent block


@functools.lru_cache(maxsize=None)
def _build_select_call(n_cap: int, r: int, c: int, dtype_name: str, tile_r: int):
    """Build (and cache) the jitted pallas_call for one problem shape."""
    dtype = jnp.dtype(dtype_name)
    grid = (r // tile_r,)
    call = pl.pallas_call(
        _select_kernel,
        out_shape=jax.ShapeDtypeStruct((r, c), dtype),
        grid_spec=pltpu.PrefetchScalarGridSpec(
            num_scalar_prefetch=1,          # the caption index, lands in SMEM
            grid=grid,
            in_specs=[
                # Data-dependent gather: block index along the caption axis is
                # read from the prefetched index (block size 1 => element idx).
                pl.BlockSpec((1, tile_r, c),
                             lambda i, idx_ref: (idx_ref[0], i, 0)),
            ],
            out_specs=pl.BlockSpec((tile_r, c), lambda i, idx_ref: (i, 0)),
        ),
        compiler_params=pltpu.CompilerParams(
            dimension_semantics=("parallel",),   # independent row tiles
        ),
    )
    return jax.jit(call)


def select_caption(captions, index, dim: int = 0):
    """jnp equivalent of torch.select(captions, dim, index).contiguous()."""
    x = jnp.asarray(captions)
    if dim != 0:
        x = jnp.moveaxis(x, dim, 0)          # bring the selected axis to front
    out_shape = x.shape[1:]
    n_cap = x.shape[0]

    if len(out_shape) == 0:                  # 1-D captions -> scalar select
        r, c = 1, 1
    elif len(out_shape) == 1:
        r, c = 1, int(out_shape[0])
    else:
        c = int(out_shape[-1])
        r = int(np.prod(out_shape[:-1]))

    tile_r = _pick_tile(r)
    x3 = x.reshape(n_cap, r, c)
    idx = jnp.asarray(index, dtype=jnp.int32).reshape(1)

    call = _build_select_call(n_cap, r, c, jnp.dtype(x.dtype).name, tile_r)
    out2d = call(idx, x3)
    return out2d.reshape(out_shape)


class SelectCaptionTensor:
    """JAX/Pallas analog of the PyTorch SelectCaptionTensor module."""

    def __init__(self, mode='random', dim: int = 0):
        self.mode = mode
        self.dim = dim
        # TODO(synk): torch.randint uses the global host RNG; here randomness
        # is a JAX key (threaded via forward(key=...) or an internal split).
        self._key = jax.random.PRNGKey(0)

    def forward(self, captions, key=None):
        captions = jnp.asarray(captions)
        n = captions.shape[0]                # len(captions)
        if self.mode == 'random':
            if key is None:
                self._key, key = jax.random.split(self._key)
            # Index stays a device scalar; it flows into SMEM via prefetch.
            index = jax.random.randint(key, (), 0, n, dtype=jnp.int32)
        elif self.mode == 'all':
            return captions
        elif isinstance(self.mode, int) and 0 <= self.mode < n:
            index = self.mode
        else:
            raise RuntimeError(
                f'Invalid SelectCaption mode "{self.mode}". Must be one of '
                f'("random", "all" or positive index).')
        return select_caption(captions, index, self.dim)

    __call__ = forward


if __name__ == "__main__":
    key = jax.random.PRNGKey(0)
    k1, k2 = jax.random.split(key)

    # Token-id captions: num_captions=5, seq=8, hidden=32.
    captions = jax.random.randint(k1, (5, 8, 32), 0, 1000, dtype=jnp.int32)

    # Fixed-index mode.
    mod_fixed = SelectCaptionTensor(mode=2, dim=0)
    out_fixed = jax.block_until_ready(mod_fixed(captions))
    np.testing.assert_array_equal(np.asarray(out_fixed), np.asarray(captions[2]))
    assert out_fixed.shape == captions.shape[1:]

    # Random mode: index drawn on device and fed to the kernel via SMEM prefetch.
    mod_rand = SelectCaptionTensor(mode='random', dim=0)
    out_rand = jax.block_until_ready(mod_rand(captions, key=k2))
    ridx = int(jax.random.randint(k2, (), 0, captions.shape[0], dtype=jnp.int32))
    np.testing.assert_array_equal(np.asarray(out_rand), np.asarray(captions[ridx]))

    # 'all' mode is an identity pass-through (no kernel launch).
    mod_all = SelectCaptionTensor(mode='all')
    np.testing.assert_array_equal(np.asarray(mod_all(captions)), np.asarray(captions))

    # Non-zero dim (float captions), exercising the moveaxis + kernel path.
    feats = jax.random.normal(k1, (4, 6, 128), dtype=jnp.float32)
    mod_dim1 = SelectCaptionTensor(mode=3, dim=1)
    out_d1 = jax.block_until_ready(mod_dim1(feats))
    np.testing.assert_array_equal(np.asarray(out_d1), np.asarray(feats[:, 3, :]))

    print("KERNEL_OK")
</pallas_src>

<mosaic_0001>
module attributes {stable_mosaic.version = 11 : i64} {
  func.func @_select_kernel(%arg0: i32, %arg1: memref<1xi32, #tpu.memory_space<smem>>, %arg2: memref<1x8x32xi32, #tpu.memory_space<vmem>>, %arg3: memref<8x32xi32, #tpu.memory_space<vmem>>) attributes {dimension_semantics = [#tpu.dimension_semantics<parallel>], iteration_bounds = array<i64: 1>, scalar_prefetch = 1 : i64, scratch_operands = 0 : i64, tpu.core_type = #tpu.core_type<tc>, window_params = [{transform_indices = @transform_0, window_bounds = array<i64: 1, 8, 32>}, {transform_indices = @transform_1, window_bounds = array<i64: 8, 32>}]} {
    %c0 = arith.constant 0 : index
    %c0_0 = arith.constant 0 : index
    %c0_1 = arith.constant 0 : index
    %0 = vector.load %arg2[%c0, %c0_0, %c0_1] : memref<1x8x32xi32, #tpu.memory_space<vmem>>, vector<1x8x32xi32>
    %1 = vector.shape_cast %0 : vector<1x8x32xi32> to vector<8x32xi32>
    %c0_2 = arith.constant 0 : index
    %c0_3 = arith.constant 0 : index
    %2 = vector.load %arg3[%c0_2, %c0_3] : memref<8x32xi32, #tpu.memory_space<vmem>>, vector<8x32xi32>
    tpu.vector_store %arg3[%c0_2, %c0_3], %1 {strides = array<i32>} : memref<8x32xi32, #tpu.memory_space<vmem>>, vector<8x32xi32>,
    return
  }
  func.func @transform_0(%arg0: i32, %arg1: memref<1xi32, #tpu.memory_space<smem>>) -> (i32, i32, i32) {
    %c0 = arith.constant 0 : index
    %0 = memref.load %arg1[%c0] : memref<1xi32, #tpu.memory_space<smem>>
    %c0_i32 = arith.constant 0 : i32
    %c0_i32_0 = arith.constant 0 : i32
    return %0, %arg0, %c0_i32 : i32, i32, i32
  }
  func.func @transform_1(%arg0: i32, %arg1: memref<1xi32, #tpu.memory_space<smem>>) -> (i32, i32) {
    %c0_i32 = arith.constant 0 : i32
    %c0_i32_0 = arith.constant 0 : i32
    return %arg0, %c0_i32 : i32, i32
  }
}

</mosaic_0001>

<bundles_post_ra>
// kernel: tpu_custom_call.1
= control target key start
LH: loop header
LB: loop body
LE: loop exit
PB: predicated region body
PF: predicated region fallthrough
CT: control target
= control target key end

     0   :  { %8 = vsyncpa [#allocation5], 0  ;;  %s128_s0 = inlined_call_operand.<no memory space> [shape: s32[1], index: 0, kind: input, shape index: {}]   ;;  %s129_s1 = inlined_call_operand.hbm [shape: s32[5,8,32], index: 1, kind: input, shape index: {}]   ;;  %s130_s2 = inlined_call_operand.hbm [shape: s32[8,32], index: 2, kind: output, shape index: {}]  }
   0x1   :  { %9 = vsyncpa [#allocation6], 0  ;;  %s47_s11 = sshll.u32 %s128_s0, 7  ;;  %s96_s15 = smov [#allocation4]  }
   0x2   :  { %s17_s14 = scalar_lea.hbm %s129_s1, %s47_s11  ;;  %s19_s16 = sshll.u32 %s96_s15, 4  ;;  %s20_s16 = int_to_ptr.vmem [resolvable:$true] %s19_s16 }
   0x3   :  { %s50_s17 = scalar_lea.hbm %s17_s14, 128  ;;  %s52_s20 = scalar_lea.hbm %s129_s1, 640 }
   0x4   :  { %p51_p0 = scmp.ne.s32.totalorder %s17_s14, %s50_s17  ;;  %p53_p1 = scmp.lt.s32.totalorder %s17_s14, %s129_s1 }
   0x5   :  { %p54_p2 = scmp.lt.s32.totalorder %s52_s20, %s50_s17 }
   0x7   :  { %p55_p3 = por %p54_p2, %p53_p1 }
   0x9   :  { %p56_p4 = pnand %p55_p3, %p51_p0 }
   0xb   :  { %59 = shalt.err (!%p56_p4)
}
   0xc   :  { %s60_s0 = scalar_lea.vmem %s20_s16, 128  ;;  %p65_p6 = scmp.lt.s32.totalorder %s20_s16, %s20_s16 }
   0xd   :  { %p61_p5 = scmp.ne.s32.totalorder %s20_s16, %s60_s0  ;;  %p66_p7 = scmp.lt.s32.totalorder %s60_s0, %s60_s0 }
   0xf   :  { %p67_p8 = por %p66_p7, %p65_p6 }
  0x11   :  { %p68_p9 = pnand %p67_p8, %p61_p5 }
  0x13   :  { %71 = shalt.err (!%p68_p9)
}
  0x14   :  { %22 = dma.hbm_to_vmem [thread:$0]  %s17_s14, 128, %s20_s16, [#allocation5]  }
  0x15   :  { %92 = dma.done.wait [#allocation5], 128  }
  0x16   :  { %93 = vsyncadd [#allocation5], 4294967168  ;;  %s97_s23 = smov [#allocation7]   ;;  %vm28_vm0 = vcmask 261120   ;;  %v27_v0 = vld [vmem:[#allocation4] sm:$0xff] }
  0x17   :  { %s36_s24 = sshll.u32 %s97_s23, 4  ;;  %29 = vst.msk [vmem:[#allocation7] sm:$0xff] %vm28_vm0, %v27_v0  ;;  %s37_s24 = int_to_ptr.vmem [resolvable:$true] %s36_s24 }
  0x18   :  { %s72_s1 = scalar_lea.vmem %s37_s24, 128  ;;  %p77_p11 = scmp.lt.s32.totalorder %s37_s24, %s37_s24 }
  0x19   :  { %p73_p10 = scmp.ne.s32.totalorder %s37_s24, %s72_s1  ;;  %p78_p12 = scmp.lt.s32.totalorder %s72_s1, %s72_s1 }
  0x1b   :  { %p79_p13 = por %p78_p12, %p77_p11 }
  0x1d   :  { %p80_p0 = pnand %p79_p13, %p73_p10 }
  0x1f   :  { %83 = shalt.err (!%p80_p0)
}
  0x20   :  { %39 = dma.vmem_to_hbm [thread:$0]  %s37_s24, 128, %s130_s2, [#allocation6]  }
  0x21   :  { %94 = dma.done.wait [#allocation6], 128  }
  0x22   :  { %95 = vsyncadd [#allocation6], 4294967168 }
  0x23   :  { %43 = vsyncpa [#allocation5], 1 }
  0x24   :  { %44 = vsyncpa [#allocation6], 1 }

</bundles_post_ra>
